<compile_context>
chip_gen: v5e
topology: v5e:2x2
jax: 0.10.0
libtpu: 0.0.40
codegen_flags: <defaults>
</compile_context>

<pallas_src>
import jax
import jax.numpy as jnp
from jax.experimental import pallas as pl
from jax.experimental.pallas import tpu as pltpu

# ---------------- configuration (small synthetic shapes) ----------------
BATCH = 2                   # batch of images (grid axis, "parallel")
NUM_CLASSES = 12            # seg-model class count (covers ids up to 11)
H, W = 16, 16               # spatial size
HW = H * W                  # 256 -> lane-dense (multiple of 128)
IMG_C = 3                   # RGB
NUM_REGIONS = 4             # coarse segmentation groups
VALID_THRESHOLD = 0.002

# coarse region groups used when use_seg_model=True (hard-coded in postprocess)
REGION_IDS = ((2, 11, 1),
              (4, 7),
              (5, 6, 7),
              (9, 10))


def _fashion_segmentor_kernel(logits_ref,   # VMEM [NUM_CLASSES, HW] f32
                              img_ref,      # VMEM [IMG_C, HW]      f32 (raw, [0,1])
                              out_ref,      # VMEM [NUM_REGIONS*IMG_C, HW] f32
                              pct_ref):     # VMEM [NUM_REGIONS, 1] f32 zero-pixel fraction
    # ---- per-pixel argmax over class logits: full-block ops, no per-class loop ----
    lg = logits_ref[...]                                         # (NUM_CLASSES, HW)
    best = jnp.max(lg, axis=0, keepdims=True)                    # (1, HW)   XLU sublane reduce
    cls_iota = jax.lax.broadcasted_iota(jnp.int32, (NUM_CLASSES, HW), 0)
    # min index among ties == torch.argmax first-max semantics
    seg = jnp.min(jnp.where(lg == best, cls_iota, NUM_CLASSES),
                  axis=0, keepdims=True)                         # (1, HW) int32

    img = img_ref[...]                                           # (IMG_C, HW)
    # Hoisted all-channel zero test of the raw image:
    #   rev_c == 0  <=>  mask == 0  or  img_c <= 0   (rev = clip(img*mask, 0, 1))
    #   so all channels of rev zero <=> mask == 0 or max_c(img_c) <= 0.
    img_zero = jnp.max(img, axis=0, keepdims=True) <= 0.0        # (1, HW) bool

    inv_total = 1.0 / float(HW)
    zero_rows = []
    # ---- static pass per coarse region; stores land in one dense (12,256) slab ----
    for r, ids in enumerate(REGION_IDS):
        m = seg == ids[0]
        for cid in ids[1:]:                                      # torch.isin
            m = m | (seg == cid)                                 # (1, HW) bool
        maskf = m.astype(jnp.float32)
        # folded normalize / reverse-normalise:
        #   ((img-mean)/std * mask) * std + mean) * mask == img * mask
        out_ref[pl.ds(IMG_C * r, IMG_C), :] = jnp.clip(img * maskf, 0.0, 1.0)
        zero_rows.append((img_zero | ~m).astype(jnp.float32))    # (1, HW)

    zero_all = jnp.concatenate(zero_rows, axis=0)                # (NUM_REGIONS, HW)
    # single cross-lane reduce + single store (one tiny writeback DMA)
    pct_ref[...] = jnp.sum(zero_all, axis=1, keepdims=True) * inv_total


def fashion_segmentor_forward(img, logits):
    """img:    [B, IMG_C, H, W] float32 raw image in [0, 1]
       logits: [B, NUM_CLASSES, H, W] float32 seg-model logits.

    Returns (style_attrs [B, R, IMG_C, H, W] f32 in [0,1], valid [B, R] bool)."""
    B = img.shape[0]
    img_flat = img.reshape(B, IMG_C, HW)
    logits_flat = logits.reshape(B, NUM_CLASSES, HW)

    out_shapes = (
        jax.ShapeDtypeStruct((B, NUM_REGIONS * IMG_C, HW), jnp.float32),
        jax.ShapeDtypeStruct((B, NUM_REGIONS, 1), jnp.float32),
    )

    slab, pct = pl.pallas_call(
        _fashion_segmentor_kernel,
        out_shape=out_shapes,
        grid=(B,),
        in_specs=[
            # batch dim squeezed: kernel sees lane-dense 2-D blocks
            pl.BlockSpec((None, NUM_CLASSES, HW), lambda b: (b, 0, 0)),
            pl.BlockSpec((None, IMG_C, HW), lambda b: (b, 0, 0)),
        ],
        out_specs=(
            pl.BlockSpec((None, NUM_REGIONS * IMG_C, HW), lambda b: (b, 0, 0)),
            pl.BlockSpec((None, NUM_REGIONS, 1), lambda b: (b, 0, 0)),
        ),
        compiler_params=pltpu.CompilerParams(
            dimension_semantics=("parallel",)),   # both TCs on v7x; no-op v5e/v6e
    )(logits_flat, img_flat)

    # rows r*3+c of the slab hold (region r, channel c) -> reshape is a pure view
    style_attrs = slab.reshape(B, NUM_REGIONS, IMG_C, H, W)
    valid = pct[:, :, 0] < VALID_THRESHOLD                        # is_attr_valid per region
    # TODO(synk): _crop_and_recentre (data-dependent bbox crop + PIL resize to
    # (224,224)) is host-side image manipulation with no Pallas equivalent.
    return style_attrs, valid


def _reference(img, logits):
    """Pure-JAX reference of the numeric hot path for a correctness check."""
    seg = jnp.argmax(logits, axis=1)                              # (B, H, W)
    outs, valids = [], []
    for ids in REGION_IDS:
        mask = jnp.isin(seg, jnp.asarray(ids, jnp.int32)).astype(jnp.float32)   # (B,H,W)
        rev = jnp.clip(img * mask[:, None], 0.0, 1.0)                           # (B,3,H,W)
        outs.append(rev)
        zero = jnp.all(rev == 0.0, axis=1)                                      # (B,H,W)
        valids.append(jnp.mean(zero.astype(jnp.float32), axis=(1, 2)) < VALID_THRESHOLD)
    return jnp.stack(outs, axis=1), jnp.stack(valids, axis=1)     # (B,4,3,H,W), (B,4)


if __name__ == "__main__":
    key = jax.random.PRNGKey(0)
    k_img, k_logits = jax.random.split(key)

    img = jax.random.uniform(k_img, (BATCH, IMG_C, H, W), jnp.float32)            # raw image in [0,1]
    logits = jax.random.normal(k_logits, (BATCH, NUM_CLASSES, H, W), jnp.float32)  # simulated seg logits

    style_attrs, valid = fashion_segmentor_forward(img, logits)
    jax.block_until_ready(style_attrs)
    jax.block_until_ready(valid)

    assert style_attrs.shape == (BATCH, NUM_REGIONS, IMG_C, H, W)
    assert valid.shape == (BATCH, NUM_REGIONS)

    ref_attrs, ref_valid = _reference(img, logits)
    assert jnp.allclose(style_attrs, ref_attrs, atol=1e-6)
    assert bool(jnp.all(valid == ref_valid))

    print("KERNEL_OK")
</pallas_src>

<mosaic_0001>
module attributes {stable_mosaic.version = 11 : i64} {
  func.func @_fashion_segmentor_kernel(%arg0: i32, %arg1: memref<1x12x256xf32, #tpu.memory_space<vmem>>, %arg2: memref<1x3x256xf32, #tpu.memory_space<vmem>>, %arg3: memref<1x12x256xf32, #tpu.memory_space<vmem>>, %arg4: memref<1x4x1xf32, #tpu.memory_space<vmem>>) attributes {dimension_semantics = [#tpu.dimension_semantics<parallel>], iteration_bounds = array<i64: 2>, scalar_prefetch = 0 : i64, scratch_operands = 0 : i64, tpu.core_type = #tpu.core_type<tc>, window_params = [{transform_indices = @transform_0, window_bounds = array<i64: 1, 12, 256>}, {transform_indices = @transform_1, window_bounds = array<i64: 1, 3, 256>}, {transform_indices = @transform_2, window_bounds = array<i64: 1, 12, 256>}, {transform_indices = @transform_3, window_bounds = array<i64: 1, 4, 1>}]} {
    %c0 = arith.constant 0 : index
    %c0_0 = arith.constant 0 : index
    %c0_1 = arith.constant 0 : index
    %0 = vector.load %arg1[%c0, %c0_0, %c0_1] : memref<1x12x256xf32, #tpu.memory_space<vmem>>, vector<1x12x256xf32>
    %1 = vector.shape_cast %0 : vector<1x12x256xf32> to vector<12x256xf32>
    %cst = arith.constant dense<0xFF800000> : vector<256xf32>
    %2 = vector.multi_reduction <maximumf>, %1, %cst [0] : vector<12x256xf32> to vector<256xf32>
    %3 = vector.shape_cast %2 : vector<256xf32> to vector<1x256xf32>
    %4 = tpu.iota {dimensions = array<i32: 0>} : vector<12x256xi32>
    %5 = vector.broadcast %3 : vector<1x256xf32> to vector<12x256xf32>
    %6 = arith.cmpf oeq, %1, %5 : vector<12x256xf32>
    %c12_i32 = arith.constant 12 : i32
    %7 = vector.broadcast %c12_i32 : i32 to vector<12x256xi32>
    %8 = arith.select %6, %4, %7 : vector<12x256xi1>, vector<12x256xi32>
    %cst_2 = arith.constant dense<2147483647> : vector<256xi32>
    %9 = vector.multi_reduction <minsi>, %8, %cst_2 [0] : vector<12x256xi32> to vector<256xi32>
    %10 = vector.shape_cast %9 : vector<256xi32> to vector<1x256xi32>
    %c0_3 = arith.constant 0 : index
    %c0_4 = arith.constant 0 : index
    %c0_5 = arith.constant 0 : index
    %11 = vector.load %arg2[%c0_3, %c0_4, %c0_5] : memref<1x3x256xf32, #tpu.memory_space<vmem>>, vector<1x3x256xf32>
    %12 = vector.shape_cast %11 : vector<1x3x256xf32> to vector<3x256xf32>
    %cst_6 = arith.constant dense<0xFF800000> : vector<256xf32>
    %13 = vector.multi_reduction <maximumf>, %12, %cst_6 [0] : vector<3x256xf32> to vector<256xf32>
    %14 = vector.shape_cast %13 : vector<256xf32> to vector<1x256xf32>
    %cst_7 = arith.constant 0.000000e+00 : f32
    %15 = vector.broadcast %cst_7 : f32 to vector<1x256xf32>
    %16 = arith.cmpf ole, %14, %15 : vector<1x256xf32>
    %c2_i32 = arith.constant 2 : i32
    %17 = vector.broadcast %c2_i32 : i32 to vector<1x256xi32>
    %18 = arith.cmpi eq, %10, %17 : vector<1x256xi32>
    %c11_i32 = arith.constant 11 : i32
    %19 = vector.broadcast %c11_i32 : i32 to vector<1x256xi32>
    %20 = arith.cmpi eq, %10, %19 : vector<1x256xi32>
    %21 = arith.ori %18, %20 : vector<1x256xi1>
    %c1_i32 = arith.constant 1 : i32
    %22 = vector.broadcast %c1_i32 : i32 to vector<1x256xi32>
    %23 = arith.cmpi eq, %10, %22 : vector<1x256xi32>
    %24 = arith.ori %21, %23 : vector<1x256xi1>
    %25 = arith.extui %24 : vector<1x256xi1> to vector<1x256xi32>
    %26 = arith.sitofp %25 : vector<1x256xi32> to vector<1x256xf32>
    %27 = vector.broadcast %26 : vector<1x256xf32> to vector<3x256xf32>
    %28 = arith.mulf %12, %27 : vector<3x256xf32>
    %cst_8 = arith.constant 0.000000e+00 : f32
    %cst_9 = arith.constant 1.000000e+00 : f32
    %29 = vector.broadcast %cst_8 : f32 to vector<3x256xf32>
    %30 = arith.maximumf %29, %28 : vector<3x256xf32>
    %31 = vector.broadcast %cst_9 : f32 to vector<3x256xf32>
    %32 = arith.minimumf %31, %30 : vector<3x256xf32>
    %c0_10 = arith.constant 0 : index
    %c0_11 = arith.constant 0 : index
    %c0_12 = arith.constant 0 : index
    %33 = vector.load %arg3[%c0_10, %c0_11, %c0_12] : memref<1x12x256xf32, #tpu.memory_space<vmem>>, vector<1x3x256xf32>
    %34 = vector.shape_cast %33 : vector<1x3x256xf32> to vector<3x256xf32>
    %35 = vector.shape_cast %32 : vector<3x256xf32> to vector<1x3x256xf32>
    tpu.vector_store %arg3[%c0_10, %c0_11, %c0_12], %35 {strides = array<i32>} : memref<1x12x256xf32, #tpu.memory_space<vmem>>, vector<1x3x256xf32>,
    %cst_13 = arith.constant dense<true> : vector<1x256xi1>
    %36 = arith.xori %24, %cst_13 : vector<1x256xi1>
    %37 = arith.ori %16, %36 : vector<1x256xi1>
    %38 = arith.extui %37 : vector<1x256xi1> to vector<1x256xi32>
    %39 = arith.sitofp %38 : vector<1x256xi32> to vector<1x256xf32>
    %c4_i32 = arith.constant 4 : i32
    %40 = vector.broadcast %c4_i32 : i32 to vector<1x256xi32>
    %41 = arith.cmpi eq, %10, %40 : vector<1x256xi32>
    %c7_i32 = arith.constant 7 : i32
    %42 = vector.broadcast %c7_i32 : i32 to vector<1x256xi32>
    %43 = arith.cmpi eq, %10, %42 : vector<1x256xi32>
    %44 = arith.ori %41, %43 : vector<1x256xi1>
    %45 = arith.extui %44 : vector<1x256xi1> to vector<1x256xi32>
    %46 = arith.sitofp %45 : vector<1x256xi32> to vector<1x256xf32>
    %47 = vector.broadcast %46 : vector<1x256xf32> to vector<3x256xf32>
    %48 = arith.mulf %12, %47 : vector<3x256xf32>
    %cst_14 = arith.constant 0.000000e+00 : f32
    %cst_15 = arith.constant 1.000000e+00 : f32
    %49 = vector.broadcast %cst_14 : f32 to vector<3x256xf32>
    %50 = arith.maximumf %49, %48 : vector<3x256xf32>
    %51 = vector.broadcast %cst_15 : f32 to vector<3x256xf32>
    %52 = arith.minimumf %51, %50 : vector<3x256xf32>
    %c0_16 = arith.constant 0 : index
    %c3 = arith.constant 3 : index
    %c0_17 = arith.constant 0 : index
    %53 = vector.load %arg3[%c0_16, %c3, %c0_17] : memref<1x12x256xf32, #tpu.memory_space<vmem>>, vector<1x3x256xf32>
    %54 = vector.shape_cast %53 : vector<1x3x256xf32> to vector<3x256xf32>
    %55 = vector.shape_cast %52 : vector<3x256xf32> to vector<1x3x256xf32>
    tpu.vector_store %arg3[%c0_16, %c3, %c0_17], %55 {strides = array<i32>} : memref<1x12x256xf32, #tpu.memory_space<vmem>>, vector<1x3x256xf32>,
    %cst_18 = arith.constant dense<true> : vector<1x256xi1>
    %56 = arith.xori %44, %cst_18 : vector<1x256xi1>
    %57 = arith.ori %16, %56 : vector<1x256xi1>
    %58 = arith.extui %57 : vector<1x256xi1> to vector<1x256xi32>
    %59 = arith.sitofp %58 : vector<1x256xi32> to vector<1x256xf32>
    %c5_i32 = arith.constant 5 : i32
    %60 = vector.broadcast %c5_i32 : i32 to vector<1x256xi32>
    %61 = arith.cmpi eq, %10, %60 : vector<1x256xi32>
    %c6_i32 = arith.constant 6 : i32
    %62 = vector.broadcast %c6_i32 : i32 to vector<1x256xi32>
    %63 = arith.cmpi eq, %10, %62 : vector<1x256xi32>
    %64 = arith.ori %61, %63 : vector<1x256xi1>
    %c7_i32_19 = arith.constant 7 : i32
    %65 = vector.broadcast %c7_i32_19 : i32 to vector<1x256xi32>
    %66 = arith.cmpi eq, %10, %65 : vector<1x256xi32>
    %67 = arith.ori %64, %66 : vector<1x256xi1>
    %68 = arith.extui %67 : vector<1x256xi1> to vector<1x256xi32>
    %69 = arith.sitofp %68 : vector<1x256xi32> to vector<1x256xf32>
    %70 = vector.broadcast %69 : vector<1x256xf32> to vector<3x256xf32>
    %71 = arith.mulf %12, %70 : vector<3x256xf32>
    %cst_20 = arith.constant 0.000000e+00 : f32
    %cst_21 = arith.constant 1.000000e+00 : f32
    %72 = vector.broadcast %cst_20 : f32 to vector<3x256xf32>
    %73 = arith.maximumf %72, %71 : vector<3x256xf32>
    %74 = vector.broadcast %cst_21 : f32 to vector<3x256xf32>
    %75 = arith.minimumf %74, %73 : vector<3x256xf32>
    %c0_22 = arith.constant 0 : index
    %c6 = arith.constant 6 : index
    %c0_23 = arith.constant 0 : index
    %76 = vector.load %arg3[%c0_22, %c6, %c0_23] : memref<1x12x256xf32, #tpu.memory_space<vmem>>, vector<1x3x256xf32>
    %77 = vector.shape_cast %76 : vector<1x3x256xf32> to vector<3x256xf32>
    %78 = vector.shape_cast %75 : vector<3x256xf32> to vector<1x3x256xf32>
    tpu.vector_store %arg3[%c0_22, %c6, %c0_23], %78 {strides = array<i32>} : memref<1x12x256xf32, #tpu.memory_space<vmem>>, vector<1x3x256xf32>,
    %cst_24 = arith.constant dense<true> : vector<1x256xi1>
    %79 = arith.xori %67, %cst_24 : vector<1x256xi1>
    %80 = arith.ori %16, %79 : vector<1x256xi1>
    %81 = arith.extui %80 : vector<1x256xi1> to vector<1x256xi32>
    %82 = arith.sitofp %81 : vector<1x256xi32> to vector<1x256xf32>
    %c9_i32 = arith.constant 9 : i32
    %83 = vector.broadcast %c9_i32 : i32 to vector<1x256xi32>
    %84 = arith.cmpi eq, %10, %83 : vector<1x256xi32>
    %c10_i32 = arith.constant 10 : i32
    %85 = vector.broadcast %c10_i32 : i32 to vector<1x256xi32>
    %86 = arith.cmpi eq, %10, %85 : vector<1x256xi32>
    %87 = arith.ori %84, %86 : vector<1x256xi1>
    %88 = arith.extui %87 : vector<1x256xi1> to vector<1x256xi32>
    %89 = arith.sitofp %88 : vector<1x256xi32> to vector<1x256xf32>
    %90 = vector.broadcast %89 : vector<1x256xf32> to vector<3x256xf32>
    %91 = arith.mulf %12, %90 : vector<3x256xf32>
    %cst_25 = arith.constant 0.000000e+00 : f32
    %cst_26 = arith.constant 1.000000e+00 : f32
    %92 = vector.broadcast %cst_25 : f32 to vector<3x256xf32>
    %93 = arith.maximumf %92, %91 : vector<3x256xf32>
    %94 = vector.broadcast %cst_26 : f32 to vector<3x256xf32>
    %95 = arith.minimumf %94, %93 : vector<3x256xf32>
    %c0_27 = arith.constant 0 : index
    %c9 = arith.constant 9 : index
    %c0_28 = arith.constant 0 : index
    %96 = vector.load %arg3[%c0_27, %c9, %c0_28] : memref<1x12x256xf32, #tpu.memory_space<vmem>>, vector<1x3x256xf32>
    %97 = vector.shape_cast %96 : vector<1x3x256xf32> to vector<3x256xf32>
    %98 = vector.shape_cast %95 : vector<3x256xf32> to vector<1x3x256xf32>
    tpu.vector_store %arg3[%c0_27, %c9, %c0_28], %98 {strides = array<i32>} : memref<1x12x256xf32, #tpu.memory_space<vmem>>, vector<1x3x256xf32>,
    %cst_29 = arith.constant dense<true> : vector<1x256xi1>
    %99 = arith.xori %87, %cst_29 : vector<1x256xi1>
    %100 = arith.ori %16, %99 : vector<1x256xi1>
    %101 = arith.extui %100 : vector<1x256xi1> to vector<1x256xi32>
    %102 = arith.sitofp %101 : vector<1x256xi32> to vector<1x256xf32>
    %103 = tpu.concatenate %39, %59, %82, %102 in 0 : vector<1x256xf32>, vector<1x256xf32>, vector<1x256xf32>, vector<1x256xf32> -> vector<4x256xf32>
    %cst_30 = arith.constant dense<0.000000e+00> : vector<4xf32>
    %104 = vector.multi_reduction <add>, %103, %cst_30 [1] : vector<4x256xf32> to vector<4xf32>
    %105 = vector.shape_cast %104 : vector<4xf32> to vector<4x1xf32>
    %cst_31 = arith.constant 3.906250e-03 : f32
    %106 = vector.broadcast %cst_31 : f32 to vector<4x1xf32>
    %107 = arith.mulf %105, %106 : vector<4x1xf32>
    %c0_32 = arith.constant 0 : index
    %c0_33 = arith.constant 0 : index
    %c0_34 = arith.constant 0 : index
    %108 = vector.load %arg4[%c0_32, %c0_33, %c0_34] : memref<1x4x1xf32, #tpu.memory_space<vmem>>, vector<1x4x1xf32>
    %109 = vector.shape_cast %108 : vector<1x4x1xf32> to vector<4x1xf32>
    %110 = vector.shape_cast %107 : vector<4x1xf32> to vector<1x4x1xf32>
    tpu.vector_store %arg4[%c0_32, %c0_33, %c0_34], %110 {strides = array<i32>} : memref<1x4x1xf32, #tpu.memory_space<vmem>>, vector<1x4x1xf32>,
    return
  }
  func.func @transform_0(%arg0: i32) -> (i32, i32, i32) {
    %c0_i32 = arith.constant 0 : i32
    %c0_i32_0 = arith.constant 0 : i32
    %c0_i32_1 = arith.constant 0 : i32
    return %arg0, %c0_i32, %c0_i32_0 : i32, i32, i32
  }
  func.func @transform_1(%arg0: i32) -> (i32, i32, i32) {
    %c0_i32 = arith.constant 0 : i32
    %c0_i32_0 = arith.constant 0 : i32
    %c0_i32_1 = arith.constant 0 : i32
    return %arg0, %c0_i32, %c0_i32_0 : i32, i32, i32
  }
  func.func @transform_2(%arg0: i32) -> (i32, i32, i32) {
    %c0_i32 = arith.constant 0 : i32
    %c0_i32_0 = arith.constant 0 : i32
    %c0_i32_1 = arith.constant 0 : i32
    return %arg0, %c0_i32, %c0_i32_0 : i32, i32, i32
  }
  func.func @transform_3(%arg0: i32) -> (i32, i32, i32) {
    %c0_i32 = arith.constant 0 : i32
    %c0_i32_0 = arith.constant 0 : i32
    %c0_i32_1 = arith.constant 0 : i32
    return %arg0, %c0_i32, %c0_i32_0 : i32, i32, i32
  }
}

</mosaic_0001>

<bundles_post_ra>
// kernel: tpu_custom_call.1
= control target key start
LH: loop header
LB: loop body
LE: loop exit
PB: predicated region body
PF: predicated region fallthrough
CT: control target
= control target key end

     0   :  { %s619_s12 = smov 0   ;;  %s790_s0 = inlined_call_operand.vmem [shape: f32[2,12,256], index: 0, kind: input, shape index: {}]   ;;  %s791_s1 = inlined_call_operand.vmem [shape: f32[2,3,256], index: 1, kind: input, shape index: {}]   ;;  %s792_s2 = inlined_call_operand.vmem [shape: f32[2,12,256], index: 2, kind: output, shape index: {0}]   ;;  %s793_s3 = inlined_call_operand.vmem [shape: f32[2,4,1], index: 3, kind: output, shape index: {1}]  }
   0x1 LB: > { %s546_s13 = sadd.s32 4294967295, %s595_s12   ;;  %p550_p0 = scmp.ge.s32.totalorder %s595_s12, 1  ;;  %s595_s12 = sphi %s619_s12, %s14_s12  }
   0x2   : > { %p150_p1 = scmp.lt.s32.totalorder %s595_s12, 3 }
   0x4   : > { %p151_p2 = pnand %p550_p0, %p150_p1 }
   0x5   : > { %p183_p3 = scmp.lt.s32.totalorder (!%p151_p2), %s546_s13, 1 }
   0x6   : > { %154 = sbr.rel (%p151_p2) target bundleno = 204 (0xcc), region = 28 }
   0xb   : > { %s825_s13 = smov (!%p183_p3, %s546_s13), 1  ;;  %vm800_vm0 = vcmask 1043456   ;;  %v223_v11 = vlaneseq  ;;  %vm794_vm1 = vcmask 1042432   ;;  %v597_v60 = vmov 0.0  }
   0xc   : > { %s576_s14 = sshll.u32 %s825_s13, 5  ;;  %s577_s15 = sshll.u32 %s825_s13, 3 }
   0xd   : > { %s187_s18 = scalar_lea.vmem %s790_s0, %s576_s14  ;;  %s192_s21 = scalar_lea.vmem %s791_s1, %s577_s15  ;;  %v224_v16 = vshrl.u32 %v223_v11, 7 }
   0xe   : > { %v202_v0 = vld [vmem:[%s187_s18] sm:$0xff]  ;;  %v203_v1 = vld [vmem:[%s187_s18 + $0x8] sm:$0xff]  ;;  %v204_v2 = vld [vmem:[%s187_s18 + $0x10] sm:$0xf]  ;;  %s726_s24 = scalar_lea.vmem %s792_s2, %s576_s14  ;;  %s557_s25 = sshll.u32 %s825_s13, 2 }
   0xf   : > { %v205_v3 = vld [vmem:[%s187_s18 + $0x18] sm:$0xf]  ;;  %v207_v4 = vsel %vm800_vm0, %v204_v2, -inf  ;;  %v640_v5 = vld [vmem:[%s192_s21] sm:$0x77]  ;;  %v225_v24 = vadd.s32 8, %v224_v16  ;;  %s201_s28 = scalar_lea.vmem %s793_s3, %s557_s25 }
  0x10   : > { %v208_v6 = vmax.f32 %v202_v0, %v207_v4  ;;  %v215_v7 = vsel %vm800_vm0, %v205_v3, -inf  ;;  %260 = vst [vmem:[#allocation1] ss:$2 sm:$0xff] %v640_v5 }
  0x11   : > { %v216_v8 = vmax.f32 %v203_v1, %v215_v7 }
  0x12   : > { %v209_v9 = vrot.slane %v208_v6, 4 }
  0x13   : > { %v217_v10 = vrot.slane %v216_v8, 4 }
  0x14   : > { %v210_v12 = vmax.f32 %v208_v6, %v209_v9 }
  0x15   : > { %v218_v13 = vmax.f32 %v216_v8, %v217_v10  ;;  %v805_v10 = vmov 0 }
  0x16   : > { %v211_v14 = vrot.slane %v210_v12, 2 }
  0x17   : > { %v219_v15 = vrot.slane %v218_v13, 2  ;;  %v261_v17 = vld.sshfl [vmem:[#allocation1] sm:$0xff pattern:$0x75316420] }
  0x18   : > { %v212_v18 = vmax.f32 %v210_v12, %v211_v14  ;;  %v262_v19 = vld.sshfl [vmem:[#allocation1 + $0x8] sm:$0xff pattern:$0x75316420]  ;;  %v266_v22 = vsel %vm794_vm1, %v261_v17, -inf  ;;  %v807_v12 = vmov 0 }
  0x19   : > { %v220_v20 = vmax.f32 %v218_v13, %v219_v15  ;;  %v273_v25 = vsel %vm794_vm1, %v262_v19, -inf  ;;  %v267_v28 = vrot.slane %v266_v22, 4 }
  0x1a   : > { %v213_v21 = vrot.slane %v212_v18, 1  ;;  %v274_v29 = vrot.slane %v273_v25, 4 }
  0x1b   : > { %v221_v23 = vrot.slane %v220_v20, 1  ;;  %v268_v36 = vmax.f32 %v266_v22, %v267_v28 }
  0x1c   : > { %v214_v26 = vmax.f32 %v212_v18, %v213_v21  ;;  %v275_v38 = vmax.f32 %v273_v25, %v274_v29 }
  0x1d   : > { %v222_v27 = vmax.f32 %v220_v20, %v221_v23  ;;  %v269_v42 = vrot.slane %v268_v36, 2 }
  0x1e   : > { %vm226_vm2 = vcmp.eq.f32.partialorder %v202_v0, %v214_v26  ;;  %vm228_vm3 = vcmp.eq.f32.partialorder %v204_v2, %v214_v26  ;;  %v276_v44 = vrot.slane %v275_v38, 2 }
  0x1f   : > { %vm227_vm4 = vcmp.eq.f32.partialorder %v203_v1, %v222_v27  ;;  %vm229_vm5 = vcmp.eq.f32.partialorder %v205_v3, %v222_v27  ;;  %v230_v30 = vsel %vm226_vm2, %v224_v16, 12  ;;  %v232_v31 = vsel %vm228_vm3, %v225_v24, 12 }
  0x20   : > { %v231_v32 = vsel %vm227_vm4, %v224_v16, 12  ;;  %v233_v33 = vsel %vm229_vm5, %v225_v24, 12  ;;  %v234_v34 = vsel %vm800_vm0, %v232_v31, 2147483647  ;;  %v270_v48 = vmax.f32 %v268_v36, %v269_v42 }
  0x21   : > { %vm235_vm6 = vcmp.lt.s32.totalorder %v230_v30, %v234_v34  ;;  %v246_v35 = vsel %vm800_vm0, %v233_v33, 2147483647  ;;  %v277_v50 = vmax.f32 %v275_v38, %v276_v44  ;;  %v803_v3 = vmov 0 }
  0x22   : > { %v236_v37 = vsel %vm235_vm6, %v230_v30, %v234_v34  ;;  %vm247_vm7 = vcmp.lt.s32.totalorder %v231_v32, %v246_v35  ;;  %v271_v54 = vrot.slane %v270_v48, 1 }
  0x23   : > { %v237_v39 = vrot.slane %v236_v37, 4  ;;  %v248_v40 = vsel %vm247_vm7, %v231_v32, %v246_v35  ;;  %v278_v56 = vrot.slane %v277_v50, 1 }
  0x24   : > { %v249_v41 = vrot.slane %v248_v40, 4  ;;  %v658_v58 = vmax.f32 %v270_v48, %v271_v54 }
  0x25   : > { %vm238_vm8 = vcmp.lt.s32.totalorder %v236_v37, %v237_v39  ;;  %v660_v59 = vmax.f32 %v277_v50, %v278_v56 }
  0x26   : > { %v239_v43 = vsel %vm238_vm8, %v236_v37, %v237_v39  ;;  %vm250_vm9 = vcmp.lt.s32.totalorder %v248_v40, %v249_v41 }
  0x27   : > { %v240_v45 = vrot.slane %v239_v43, 2  ;;  %v251_v46 = vsel %vm250_vm9, %v248_v40, %v249_v41 }
  0x28   : > { %v252_v47 = vrot.slane %v251_v46, 2 }
  0x29   : > { %vm241_vm10 = vcmp.lt.s32.totalorder %v239_v43, %v240_v45 }
  0x2a   : > { %v242_v49 = vsel %vm241_vm10, %v239_v43, %v240_v45  ;;  %vm253_vm11 = vcmp.lt.s32.totalorder %v251_v46, %v252_v47  ;;  %vm796_vm10 = vcmp.le.f32.partialorder %v658_v58, 0.0 }
  0x2b   : > { %v243_v51 = vrot.slane %v242_v49, 1  ;;  %v254_v52 = vsel %vm253_vm11, %v251_v46, %v252_v47  ;;  %vm797_vm11 = vmmov 1  }
  0x2c   : > { %v255_v53 = vrot.slane %v254_v52, 1 }
  0x2d   : > { %vm244_vm12 = vcmp.lt.s32.totalorder %v242_v49, %v243_v51 }
  0x2e   : > { %v648_v55 = vsel %vm244_vm12, %v242_v49, %v243_v51  ;;  %vm256_vm13 = vcmp.lt.s32.totalorder %v254_v52, %v255_v53 }
  0x2f   : > { %v650_v57 = vsel %vm256_vm13, %v254_v52, %v255_v53  ;;  %vm282_vm14 = vcmp.eq.s32.totalorder %v648_v55, 2  ;;  %vm284_vm15 = vcmp.eq.s32.totalorder %v648_v55, 11  ;;  %vm288_vm2 = vcmp.eq.s32.totalorder %v648_v55, 1 }
  0x30   : > { %vm283_vm3 = vcmp.eq.s32.totalorder %v650_v57, 2  ;;  %vm285_vm4 = vcmp.eq.s32.totalorder %v650_v57, 11  ;;  %vm286_vm5 = vmor %vm282_vm14, %vm284_vm15  ;;  %vm289_vm6 = vcmp.eq.s32.totalorder %v650_v57, 1  ;;  %vm320_vm13 = vcmp.eq.s32.totalorder %v648_v55, 4 }
  0x31   : > { %vm287_vm7 = vmor %vm283_vm3, %vm285_vm4  ;;  %vm322_vm14 = vcmp.eq.s32.totalorder %v648_v55, 7  ;;  %vm799_vm15 = vcmp.le.f32.partialorder %v660_v59, 0.0  ;;  %vm321_vm3 = vcmp.eq.s32.totalorder %v650_v57, 4  ;;  %vm795_vm4 = vcmp.eq.s32.totalorder %v650_v57, 7 }
  0x32   : > { %vm290_vm8 = vmor %vm286_vm5, %vm288_vm2 }
  0x33   : > { %vm291_vm9 = vmor %vm287_vm7, %vm289_vm6  ;;  %v558_v61 = vsel %vm290_vm8, 1.0, %v597_v60 }
  0x34   : > { %v559_v62 = vsel %vm291_vm9, 1.0, %v597_v60  ;;  %vm312_vm12 = vmxor %vm290_vm8, %vm797_vm11 }
  0x35   : > { %v298_v63 = vrot.slane %v559_v62, 4  ;;  %vm313_vm2 = vmxor %vm291_vm9, %vm797_vm11 }
  0x36   : > { %vm676_vm5 = vmor %vm796_vm10, %vm312_vm12 }
  0x37   : > { %v299_v0 = vsel %vm800_vm0, %v558_v61, %v298_v63  ;;  %vm324_vm6 = vmor %vm320_vm13, %vm322_vm14  ;;  %vm356_vm13 = vcmp.eq.s32.totalorder %v648_v55, 5  ;;  %v560_v17 = vsel %vm676_vm5, 1.0, %v597_v60  ;;  %vm814_vm5 = vcmp.le.f32.partialorder %v658_v58, 0.0 }
  0x38   : > { %v301_v1 = vmul.f32 %v299_v0, %v640_v5  ;;  %vm684_vm7 = vmor %vm799_vm15, %vm313_vm2  ;;  %v562_v6 = vsel %vm324_vm6, 1.0, %v597_v60  ;;  %vm358_vm2 = vcmp.eq.s32.totalorder %v648_v55, 6 }
  0x39   : > { %v804_v3 = vsel %vm684_vm7, 4294967295, %v803_v3  ;;  %vm325_vm8 = vmor %vm321_vm3, %vm795_vm4  ;;  %vm357_vm3 = vcmp.eq.s32.totalorder %v650_v57, 5  ;;  %vm359_vm4 = vcmp.eq.s32.totalorder %v650_v57, 6 }
  0x3a   : > { %v302_v4 = vmax.f32 %v301_v1, 0.0  ;;  %v563_v7 = vsel %vm325_vm8, 1.0, %v597_v60  ;;  %vm348_vm9 = vmxor %vm324_vm6, %vm797_vm11 }
  0x3b   : > { %v332_v8 = vrot.slane %v563_v7, 4  ;;  %vm349_vm12 = vmxor %vm325_vm8, %vm797_vm11  ;;  %vm809_vm11 = vcmp.eq.s32.totalorder %v650_v57, 7 }
  0x3c   : > { %v303_v9 = vmin.f32 %v302_v4, 1.0  ;;  %vm698_vm1 = vmor %vm796_vm10, %vm348_vm9 }
  0x3d   : > { %v806_v10 = vsel %vm698_vm1, 4294967295, %v805_v10  ;;  %v333_v11 = vsel %vm800_vm0, %v562_v6, %v332_v8  ;;  %vm707_vm6 = vmor %vm799_vm15, %vm349_vm12  ;;  %vm432_vm1 = vcmask 1040384   ;;  %vm810_vm12 = vmmov 1  }
  0x3e   : > { %v808_v12 = vsel %vm707_vm6, 4294967295, %v807_v12  ;;  %305 = vst [vmem:[#allocation1] ss:$2 sm:$0xff] %v303_v9  ;;  %v335_v13 = vmul.f32 %v333_v11, %v640_v5  ;;  %vm360_vm8 = vmor %vm356_vm13, %vm358_vm2  ;;  %vm396_vm0 = vcmp.eq.s32.totalorder %v648_v55, 9  ;;  %vm397_vm6 = vcmp.eq.s32.totalorder %v650_v57, 9 }
  0x3f   : > { %vm361_vm9 = vmor %vm357_vm3, %vm359_vm4  ;;  %vm812_vm4 = vnez %v804_v3  ;;  %vm813_vm13 = vnez %v808_v12  ;;  %vm399_vm3 = vcmp.eq.s32.totalorder %v650_v57, 10 }
  0x40   : > { %v336_v14 = vmax.f32 %v335_v13, 0.0  ;;  %vm362_vm10 = vmor %vm360_vm8, %vm322_vm14  ;;  %vm398_vm14 = vcmp.eq.s32.totalorder %v648_v55, 10  ;;  %v561_v20 = vsel %vm812_vm4, 1.0, %v597_v60  ;;  %v565_v22 = vsel %vm813_vm13, 1.0, %v597_v60 }
  0x41   : > { %vm363_vm7 = vmor %vm361_vm9, %vm809_vm11  ;;  %v566_v15 = vsel %vm362_vm10, 1.0, %v597_v60  ;;  %vm811_vm11 = vnez %v806_v10  ;;  %vm816_vm8 = vcmp.le.f32.partialorder %v660_v59, 0.0  ;;  %v434_v30 = vsel %vm432_vm1, %v561_v20, %v565_v22 }
  0x42   : > { %v567_v16 = vsel %vm363_vm7, 1.0, %v597_v60  ;;  %vm388_vm15 = vmxor %vm362_vm10, %vm810_vm12  ;;  %v564_v18 = vsel %vm811_vm11, 1.0, %v597_v60  ;;  %v337_v21 = vmin.f32 %v336_v14, 1.0 }
  0x43   : > { %v370_v19 = vrot.slane %v567_v16, 4  ;;  %vm389_vm10 = vmxor %vm363_vm7, %vm810_vm12  ;;  %vm815_vm7 = vcmask 1043456   ;;  %v433_v28 = vsel %vm432_vm1, %v560_v17, %v564_v18 }
  0x44   : > { %vm390_vm2 = vmor %vm814_vm5, %vm388_vm15  ;;  %vm435_vm15 = vcmask 1041408  }
  0x45   : > { %v306_v23 = vld.sshfl [vmem:[#allocation1] sm:$0xff pattern:$0x75316420]  ;;  %v307_v24 = vld.sshfl [vmem:[#allocation1 + $0x8] sm:$0xff pattern:$0x75316420]  ;;  %v371_v25 = vsel %vm815_vm7, %v566_v15, %v370_v19  ;;  %vm391_vm9 = vmor %vm816_vm8, %vm389_vm10 }
  0x46   : > { %310 = vst [vmem:[%s726_s24] sm:$0x7] %v306_v23  ;;  %v373_v26 = vmul.f32 %v371_v25, %v640_v5  ;;  %v568_v27 = vsel %vm390_vm2, 1.0, %v597_v60  ;;  %vm400_vm11 = vmor %vm396_vm0, %vm398_vm14  ;;  %v569_v29 = vsel %vm391_vm9, 1.0, %v597_v60 }
  0x47   : > { %311 = vst [vmem:[%s726_s24 + $0x8] sm:$0x7] %v307_v24  ;;  %vm401_vm4 = vmor %vm397_vm6, %vm399_vm3  ;;  %v570_v32 = vsel %vm400_vm11, 1.0, %v597_v60  ;;  %v436_v35 = vsel %vm435_vm15, %v433_v28, %v568_v27  ;;  %v437_v36 = vsel %vm435_vm15, %v434_v30, %v569_v29 }
  0x48   : > { %339 = vst [vmem:[#allocation1] ss:$2 sm:$0xff] %v337_v21  ;;  %v374_v31 = vmax.f32 %v373_v26, 0.0  ;;  %v571_v33 = vsel %vm401_vm4, 1.0, %v597_v60  ;;  %vm424_vm10 = vmxor %vm400_vm11, %vm810_vm12 }
  0x49   : > { %v408_v34 = vrot.slane %v571_v33, 4  ;;  %vm425_vm0 = vmxor %vm401_vm4, %vm810_vm12  ;;  %vm820_vm12 = vcmask 1042432  }
  0x4a   : > { %vm817_vm14 = vmmov %vm814_vm5  ;;  %v375_v39 = vmin.f32 %v374_v31, 1.0 }
  0x4b   : > { %vm426_vm13 = vmor %vm817_vm14, %vm424_vm10 }
  0x4c   : > { %vm818_vm5 = vmmov %vm815_vm7  ;;  %v572_v38 = vsel %vm426_vm13, 1.0, %v597_v60 }
  0x4d   : > { %v409_v37 = vsel %vm818_vm5, %v570_v32, %v408_v34  ;;  %vm819_vm1 = vmmov %vm816_vm8  ;;  %v438_v42 = vsel %vm820_vm12, %v436_v35, %v572_v38  ;;  %vm446_vm8 = vcmask 3072  }
  0x4e   : > { %vm427_vm6 = vmor %vm819_vm1, %vm425_vm0  ;;  %v411_v40 = vmul.f32 %v409_v37, %v640_v5 }
  0x4f   : > { %v573_v41 = vsel %vm427_vm6, 1.0, %v597_v60  ;;  %vm821_vm2 = vmmov %vm820_vm12  ;;  %v340_v46 = vld.sshfl [vmem:[#allocation1] sm:$0xff pattern:$0x75316420] }
  0x50   : > { %v439_v43 = vsel %vm821_vm2, %v437_v36, %v573_v41  ;;  %vm822_vm3 = vmmov %vm818_vm5  ;;  %v341_v47 = vld.sshfl [vmem:[#allocation1 + $0x8] sm:$0xff pattern:$0x75316420]  ;;  %v342_v49 = vrot.slane %v340_v46, 5  ;;  %v412_v5 = vmax.f32 %v411_v40, 0.0 }
  0x51   : > { %v440_v44 = vsel %vm822_vm3, %v438_v42, 0.0  ;;  %vm823_vm7 = vmmov %vm822_vm3  ;;  %v343_v50 = vrot.slane %v341_v47, 5  ;;  %377 = vst [vmem:[#allocation1] ss:$2 sm:$0xff] %v375_v39 }
  0x52   : > { %v441_v45 = vsel %vm823_vm7, %v439_v43, 0.0  ;;  %346 = vst [vmem:[%s726_s24] sm:$0x38] %v342_v49  ;;  %v413_v51 = vmin.f32 %v412_v5, 1.0 }
  0x53   : > { %v442_v48 = vadd.f32 %v441_v45, %v440_v44  ;;  %347 = vst [vmem:[%s726_s24 + $0x8] sm:$0x38] %v343_v50 }
  0x55   : > { %443 = vadd.xlane.f32.xlu0 %v442_v48 }
  0x58   : > { %v378_v52 = vld.sshfl [vmem:[#allocation1] sm:$0xff pattern:$0x75316420]  ;;  %v379_v53 = vld.sshfl [vmem:[#allocation1 + $0x8] sm:$0xff pattern:$0x75316420] }
  0x59   : > { %v380_v54 = vrot.slane %v378_v52, 2  ;;  %v381_v55 = vrot.slane %v379_v53, 2  ;;  %415 = vst [vmem:[#allocation1] ss:$2 sm:$0xff] %v413_v51 }
  0x5b   : > { %384 = vst [vmem:[%s726_s24] sm:$0xc0] %v380_v54 }
  0x5c   : > { %385 = vst [vmem:[%s726_s24 + $0x8] sm:$0xc0] %v381_v55 }
  0x5d   : > { %386 = vst [vmem:[%s726_s24 + $0x10] sm:$0x1] %v380_v54 }
  0x5e   : > { %387 = vst [vmem:[%s726_s24 + $0x18] sm:$0x1] %v381_v55 }
  0x60   : > { %v416_v56 = vld.sshfl [vmem:[#allocation1] sm:$0xff pattern:$0x75316420]  ;;  %v417_v57 = vld.sshfl [vmem:[#allocation1 + $0x8] sm:$0xff pattern:$0x75316420] }
  0x61   : > { %v418_v58 = vrot.slane %v416_v56, 7  ;;  %v419_v59 = vrot.slane %v417_v57, 7 }
  0x63   : > { %422 = vst [vmem:[%s726_s24 + $0x10] sm:$0xe] %v418_v58 }
  0x64   : > { %423 = vst [vmem:[%s726_s24 + $0x18] sm:$0xe] %v419_v59 }
  0xc8   : > { %v444_v60 = vpop.xlane.xlu0 %443 }
  0xc9   : > { %v445_v61 = vmul.f32 0.00390625, %v444_v60 }
  0xcb   : > { %447 = vst.msk [vmem:[%s201_s28] sm:$0xf] %vm446_vm8, %v445_v61 }
  0xcc PF: > { %s14_s12 = sadd.s32 1, %s595_s12  }
  0xcd   : > { %p11_p4 = scmp.ge.s32.totalorder %s14_s12, 4  }
  0xcf   :  { %13 = sbr.rel (!%p11_p4) target bundleno = 1 (0x1), region = 73 }

</bundles_post_ra>
